<compile_context>
chip_gen: v5e
topology: v5e:2x2
jax: 0.10.0
libtpu: 0.0.40
codegen_flags: <defaults>
</compile_context>

<pallas_src>
import jax
import jax.numpy as jnp
from jax.experimental import pallas as pl
from jax.experimental.pallas import tpu as pltpu


_VMEM_LIMIT = 32 * 1024 * 1024       # explicit scoped-VMEM budget (valid on v5e/v6e/v7x)
_MAX_BLOCK_BYTES = 2 * 1024 * 1024   # per-block cap for the streaming apply stage


def _mish(h):
    # Mish(x) = x * tanh(softplus(x)) = x * e^x (e^x + 2) / (e^x (e^x + 2) + 2)
    # (exact identity): one exp + one divide instead of exp + log1p + tanh.
    e = jnp.exp(jnp.minimum(h, 20.0))   # clamp only to avoid inf*inf; ratio -> 1
    num = e * (e + 2.0)
    return h * (num / (num + 2.0))


# ----------------------------- Stage A: cond MLP -----------------------------

def _cond_mlp_kernel(cond_ref, w1_ref, b1_ref, w2_ref, b2_ref, wsel_ref, film_ref):
    c = cond_ref[...]                                             # (B*T, H)
    h = jnp.dot(c, w1_ref[...], preferred_element_type=jnp.float32)
    h = _mish(h + b1_ref[...])                                    # f32
    h = h.astype(w2_ref.dtype)                                    # bf16 path if requested
    h2 = jnp.dot(h, w2_ref[...], preferred_element_type=jnp.float32) + b2_ref[...]
    h2 = jnp.maximum(h2, 0.0)                                     # ReLU -> (B*T, 2H) f32
    # Block-diagonal selector folds the Linear(T,1) seq reduce + batch un-fold
    # into one MXU dot: (B, B*T) x (B*T, 2H) -> (B, 2H).
    film_ref[...] = jnp.dot(wsel_ref[...], h2,
                            preferred_element_type=jnp.float32).astype(film_ref.dtype)


def _cond_film_params(conditioning, params, compute_dtype):
    """Runs the conditioning MLP once for the whole batch; returns scale, bias (B, H)."""
    w1, b1, w2, b2, wseq = params
    B, T, H = conditioning.shape

    cond_flat = conditioning.reshape(B * T, H)
    # Block-diagonal selector: row b carries wseq in columns [b*T, (b+1)*T).
    wsel = jnp.kron(jnp.eye(B, dtype=jnp.float32), wseq.astype(jnp.float32))  # (B, B*T)

    # Optional reduced-precision MXU inputs (v6e/v7x); accumulation stays f32.
    cond_flat = cond_flat.astype(compute_dtype)
    w1c = w1.astype(compute_dtype)
    w2c = w2.astype(compute_dtype)

    def full(shape):
        return pl.BlockSpec(shape, lambda i, _s=shape: (0,) * len(_s))

    film = pl.pallas_call(
        _cond_mlp_kernel,
        out_shape=jax.ShapeDtypeStruct((B, 2 * H), jnp.float32),
        grid=(1,),
        in_specs=[full((B * T, H)),
                  full((H, H)), full((1, H)),
                  full((H, 2 * H)), full((1, 2 * H)),
                  full((B, B * T))],
        out_specs=full((B, 2 * H)),
        compiler_params=pltpu.CompilerParams(
            dimension_semantics=("arbitrary",),
            vmem_limit_bytes=_VMEM_LIMIT),
    )(cond_flat, w1c, b1, w2c, b2, wsel)

    # Split into scale/bias on the tiny (B, 2H) result OUTSIDE the kernel: no
    # lane-axis slicing at H inside (tile-unaligned when H % 128 != 0).
    return film[:, :H], film[:, H:]


# --------------------------- Stage B: FiLM apply -----------------------------

def _film_apply_kernel(scale_ref, bias_ref, x_ref, out_ref):
    # scale/bias: (1, 1, L) broadcast against x: (1, row_blk, L)
    out_ref[...] = (scale_ref[...] * x_ref[...] + bias_ref[...]).astype(out_ref.dtype)


def _lane_pack_factor(Tx, H):
    """Smallest g dividing Tx such that the packed lane width g*H is a 128-multiple."""
    if H % 128 == 0:
        return 1
    for g in range(1, Tx + 1):
        if Tx % g == 0 and (g * H) % 128 == 0:
            return g
    return 1   # fallback: still correct, stores are lane-masked


def _choose_row_block(rows, row_bytes):
    """Largest row tile keeping a block under _MAX_BLOCK_BYTES and tile-legal."""
    max_rows = max(1, _MAX_BLOCK_BYTES // max(row_bytes, 1))
    if rows <= max_rows:
        return rows                      # full extent -> always legal
    cand = (max_rows // 8) * 8
    while cand >= 8:
        if rows % cand == 0:
            return cand                  # multiple of 8 that divides rows
        cand -= 8
    return rows                          # no clean divisor: take the full extent


def film_forward(x, conditioning, params, *, compute_dtype=jnp.float32):
    """x: (B, Tx, H), conditioning: (B, T, H) -> (B, Tx, H).

    compute_dtype: dtype fed to the MXU for the conditioning-MLP matmuls
    (pass jnp.bfloat16 on v6e/v7x; accumulation is always f32).
    """
    B, Tx, H = x.shape
    scale, bias = _cond_film_params(conditioning, params, compute_dtype)   # (B, H)

    # Repack so the streamed lane axis is a >=128 multiple even for small H:
    # (B, Tx, H) -> (B, rows, g*H), g consecutive time steps per row.
    g = _lane_pack_factor(Tx, H)
    rows, lane = Tx // g, g * H
    x2 = x.reshape(B, rows, lane)
    scale2 = jnp.tile(scale, (1, g)).reshape(B, 1, lane)
    bias2 = jnp.tile(bias, (1, g)).reshape(B, 1, lane)

    row_blk = _choose_row_block(rows, lane * x.dtype.itemsize)
    grid = (B, pl.cdiv(rows, row_blk))

    out2 = pl.pallas_call(
        _film_apply_kernel,
        out_shape=jax.ShapeDtypeStruct((B, rows, lane), x.dtype),
        grid=grid,
        in_specs=[
            pl.BlockSpec((1, 1, lane), lambda b, t: (b, 0, 0)),         # scale
            pl.BlockSpec((1, 1, lane), lambda b, t: (b, 0, 0)),         # bias
            pl.BlockSpec((1, row_blk, lane), lambda b, t: (b, t, 0)),   # x
        ],
        out_specs=pl.BlockSpec((1, row_blk, lane), lambda b, t: (b, t, 0)),
        compiler_params=pltpu.CompilerParams(
            dimension_semantics=("parallel", "parallel"),
            vmem_limit_bytes=_VMEM_LIMIT),
    )(scale2, bias2, x2)

    return out2.reshape(B, Tx, H)


# ------------------------------ reference / test -----------------------------

def film_reference(x, conditioning, params):
    """Pure-JAX reference matching the PyTorch forward."""
    w1, b1, w2, b2, wseq = params
    h = conditioning @ w1 + b1[0]
    h = h * jnp.tanh(jax.nn.softplus(h))           # Mish
    h = h @ w2 + b2[0]
    h = jnp.maximum(h, 0.0)                        # ReLU -> (B, T, 2H)
    film = jnp.einsum("t,btc->bc", wseq[0], h)     # Linear(T, 1) over seq
    H = x.shape[-1]
    scale, bias = film[:, :H], film[:, H:]
    return scale[:, None, :] * x + bias[:, None, :]


def init_params(key, seq_length, hidden_dim):
    """Deterministic synthetic parameters (JAX layout: W is (in, out))."""
    k1, k2, k3, k4, k5 = jax.random.split(key, 5)
    H, T = hidden_dim, seq_length
    w1 = jax.random.normal(k1, (H, H), jnp.float32) * 0.1
    b1 = jax.random.normal(k2, (1, H), jnp.float32) * 0.1
    w2 = jax.random.normal(k3, (H, 2 * H), jnp.float32) * 0.1
    b2 = jax.random.normal(k4, (1, 2 * H), jnp.float32) * 0.1
    wseq = jax.random.normal(k5, (1, T), jnp.float32) * 0.1
    return (w1, b1, w2, b2, wseq)


if __name__ == "__main__":
    B, T, Tx, H = 2, 8, 16, 32  # batch, cond seq len, x seq len, hidden_dim

    key = jax.random.PRNGKey(0)
    kx, kc, kp = jax.random.split(key, 3)
    x = jax.random.normal(kx, (B, Tx, H), jnp.float32)
    conditioning = jax.random.normal(kc, (B, T, H), jnp.float32)
    params = init_params(kp, T, H)

    ref = film_reference(x, conditioning, params)

    # f32 MXU path: exact match with the reference.
    out = jax.block_until_ready(film_forward(x, conditioning, params))
    assert out.shape == (B, Tx, H)
    assert jnp.allclose(out, ref, atol=1e-5, rtol=1e-5), "f32 mismatch vs reference"

    # bf16 MXU path for the cond MLP (v6e/v7x perf option); f32 accumulation.
    out_bf16 = jax.block_until_ready(
        film_forward(x, conditioning, params, compute_dtype=jnp.bfloat16))
    assert jnp.allclose(out_bf16, ref, atol=5e-2, rtol=5e-2), "bf16 mismatch vs reference"

    print("KERNEL_OK")
</pallas_src>

<mosaic_0001>
module attributes {stable_mosaic.version = 11 : i64} {
  func.func @_cond_mlp_kernel(%arg0: i32, %arg1: memref<16x32xf32, #tpu.memory_space<vmem>>, %arg2: memref<32x32xf32, #tpu.memory_space<vmem>>, %arg3: memref<1x32xf32, #tpu.memory_space<vmem>>, %arg4: memref<32x64xf32, #tpu.memory_space<vmem>>, %arg5: memref<1x64xf32, #tpu.memory_space<vmem>>, %arg6: memref<2x16xf32, #tpu.memory_space<vmem>>, %arg7: memref<2x64xf32, #tpu.memory_space<vmem>>) attributes {dimension_semantics = [#tpu.dimension_semantics<arbitrary>], iteration_bounds = array<i64: 1>, scalar_prefetch = 0 : i64, scratch_operands = 0 : i64, tpu.core_type = #tpu.core_type<tc>, window_params = [{pipeline_mode = #tpu.pipeline_mode<synchronous>, transform_indices = @transform_0, window_bounds = array<i64: 16, 32>}, {pipeline_mode = #tpu.pipeline_mode<synchronous>, transform_indices = @transform_1, window_bounds = array<i64: 32, 32>}, {pipeline_mode = #tpu.pipeline_mode<synchronous>, transform_indices = @transform_2, window_bounds = array<i64: 1, 32>}, {pipeline_mode = #tpu.pipeline_mode<synchronous>, transform_indices = @transform_3, window_bounds = array<i64: 32, 64>}, {pipeline_mode = #tpu.pipeline_mode<synchronous>, transform_indices = @transform_4, window_bounds = array<i64: 1, 64>}, {pipeline_mode = #tpu.pipeline_mode<synchronous>, transform_indices = @transform_5, window_bounds = array<i64: 2, 16>}, {pipeline_mode = #tpu.pipeline_mode<synchronous>, transform_indices = @transform_6, window_bounds = array<i64: 2, 64>}]} {
    %c0 = arith.constant 0 : index
    %c0_0 = arith.constant 0 : index
    %0 = vector.load %arg1[%c0, %c0_0] : memref<16x32xf32, #tpu.memory_space<vmem>>, vector<16x32xf32>
    %c0_1 = arith.constant 0 : index
    %c0_2 = arith.constant 0 : index
    %1 = vector.load %arg2[%c0_1, %c0_2] : memref<32x32xf32, #tpu.memory_space<vmem>>, vector<32x32xf32>
    %cst = arith.constant dense<0.000000e+00> : vector<16x32xf32>
    %2 = tpu.matmul %0, %1, %cst {dimension_numbers = #tpu.dot_dimension_numbers<[1], [0], [0], [1], [0, 0, 1, 1], [], []>} : vector<16x32xf32>, vector<32x32xf32>, vector<16x32xf32> -> vector<16x32xf32>
    %c0_3 = arith.constant 0 : index
    %c0_4 = arith.constant 0 : index
    %3 = vector.load %arg3[%c0_3, %c0_4] : memref<1x32xf32, #tpu.memory_space<vmem>>, vector<1x32xf32>
    %4 = vector.broadcast %3 : vector<1x32xf32> to vector<16x32xf32>
    %5 = arith.addf %2, %4 : vector<16x32xf32>
    %cst_5 = arith.constant 2.000000e+01 : f32
    %6 = vector.broadcast %cst_5 : f32 to vector<16x32xf32>
    %7 = arith.minimumf %5, %6 : vector<16x32xf32>
    %8 = math.exp %7 : vector<16x32xf32>
    %cst_6 = arith.constant 2.000000e+00 : f32
    %9 = vector.broadcast %cst_6 : f32 to vector<16x32xf32>
    %10 = arith.addf %8, %9 : vector<16x32xf32>
    %11 = arith.mulf %8, %10 : vector<16x32xf32>
    %cst_7 = arith.constant 2.000000e+00 : f32
    %12 = vector.broadcast %cst_7 : f32 to vector<16x32xf32>
    %13 = arith.addf %11, %12 : vector<16x32xf32>
    %14 = arith.divf %11, %13 : vector<16x32xf32>
    %15 = arith.mulf %5, %14 : vector<16x32xf32>
    %c0_8 = arith.constant 0 : index
    %c0_9 = arith.constant 0 : index
    %16 = vector.load %arg4[%c0_8, %c0_9] : memref<32x64xf32, #tpu.memory_space<vmem>>, vector<32x64xf32>
    %cst_10 = arith.constant dense<0.000000e+00> : vector<16x64xf32>
    %17 = tpu.matmul %15, %16, %cst_10 {dimension_numbers = #tpu.dot_dimension_numbers<[1], [0], [0], [1], [0, 0, 1, 1], [], []>} : vector<16x32xf32>, vector<32x64xf32>, vector<16x64xf32> -> vector<16x64xf32>
    %c0_11 = arith.constant 0 : index
    %c0_12 = arith.constant 0 : index
    %18 = vector.load %arg5[%c0_11, %c0_12] : memref<1x64xf32, #tpu.memory_space<vmem>>, vector<1x64xf32>
    %19 = vector.broadcast %18 : vector<1x64xf32> to vector<16x64xf32>
    %20 = arith.addf %17, %19 : vector<16x64xf32>
    %cst_13 = arith.constant 0.000000e+00 : f32
    %21 = vector.broadcast %cst_13 : f32 to vector<16x64xf32>
    %22 = arith.maximumf %20, %21 : vector<16x64xf32>
    %c0_14 = arith.constant 0 : index
    %c0_15 = arith.constant 0 : index
    %23 = vector.load %arg6[%c0_14, %c0_15] : memref<2x16xf32, #tpu.memory_space<vmem>>, vector<2x16xf32>
    %cst_16 = arith.constant dense<0.000000e+00> : vector<2x64xf32>
    %24 = tpu.matmul %23, %22, %cst_16 {dimension_numbers = #tpu.dot_dimension_numbers<[1], [0], [0], [1], [0, 0, 1, 1], [], []>} : vector<2x16xf32>, vector<16x64xf32>, vector<2x64xf32> -> vector<2x64xf32>
    %c0_17 = arith.constant 0 : index
    %c0_18 = arith.constant 0 : index
    %25 = vector.load %arg7[%c0_17, %c0_18] : memref<2x64xf32, #tpu.memory_space<vmem>>, vector<2x64xf32>
    tpu.vector_store %arg7[%c0_17, %c0_18], %24 {strides = array<i32>} : memref<2x64xf32, #tpu.memory_space<vmem>>, vector<2x64xf32>,
    return
  }
  func.func @transform_0(%arg0: i32) -> (i32, i32) {
    %c0_i32 = arith.constant 0 : i32
    %c0_i32_0 = arith.constant 0 : i32
    %c0_i32_1 = arith.constant 0 : i32
    return %c0_i32, %c0_i32_0 : i32, i32
  }
  func.func @transform_1(%arg0: i32) -> (i32, i32) {
    %c0_i32 = arith.constant 0 : i32
    %c0_i32_0 = arith.constant 0 : i32
    %c0_i32_1 = arith.constant 0 : i32
    return %c0_i32, %c0_i32_0 : i32, i32
  }
  func.func @transform_2(%arg0: i32) -> (i32, i32) {
    %c0_i32 = arith.constant 0 : i32
    %c0_i32_0 = arith.constant 0 : i32
    %c0_i32_1 = arith.constant 0 : i32
    return %c0_i32, %c0_i32_0 : i32, i32
  }
  func.func @transform_3(%arg0: i32) -> (i32, i32) {
    %c0_i32 = arith.constant 0 : i32
    %c0_i32_0 = arith.constant 0 : i32
    %c0_i32_1 = arith.constant 0 : i32
    return %c0_i32, %c0_i32_0 : i32, i32
  }
  func.func @transform_4(%arg0: i32) -> (i32, i32) {
    %c0_i32 = arith.constant 0 : i32
    %c0_i32_0 = arith.constant 0 : i32
    %c0_i32_1 = arith.constant 0 : i32
    return %c0_i32, %c0_i32_0 : i32, i32
  }
  func.func @transform_5(%arg0: i32) -> (i32, i32) {
    %c0_i32 = arith.constant 0 : i32
    %c0_i32_0 = arith.constant 0 : i32
    %c0_i32_1 = arith.constant 0 : i32
    return %c0_i32, %c0_i32_0 : i32, i32
  }
  func.func @transform_6(%arg0: i32) -> (i32, i32) {
    %c0_i32 = arith.constant 0 : i32
    %c0_i32_0 = arith.constant 0 : i32
    %c0_i32_1 = arith.constant 0 : i32
    return %c0_i32, %c0_i32_0 : i32, i32
  }
}

</mosaic_0001>

<bundles_post_ra>
// kernel: tpu_custom_call.1
= control target key start
LH: loop header
LB: loop body
LE: loop exit
PB: predicated region body
PF: predicated region fallthrough
CT: control target
= control target key end

     0   :  { %11 = vsyncpa [#allocation3], 0  ;;  %s475_s0 = inlined_call_operand.hbm [shape: f32[16,32], index: 0, kind: input, shape index: {}]   ;;  %s476_s1 = inlined_call_operand.hbm [shape: f32[32,32], index: 1, kind: input, shape index: {}]   ;;  %s477_s2 = inlined_call_operand.vmem [shape: f32[1,32], index: 2, kind: input, shape index: {}]   ;;  %s478_s3 = inlined_call_operand.hbm [shape: f32[32,64], index: 3, kind: input, shape index: {}]   ;;  %s479_s4 = inlined_call_operand.hbm [shape: f32[1,64], index: 4, kind: input, shape index: {}]   ;;  %s480_s5 = inlined_call_operand.vmem [shape: f32[2,16], index: 5, kind: input, shape index: {}]   ;;  %s481_s6 = inlined_call_operand.hbm [shape: f32[2,64], index: 6, kind: output, shape index: {}]  }
   0x1   :  { %12 = vsyncpa [#allocation6], 0 }
   0x2   :  { %13 = vsyncpa [#allocation9], 0 }
   0x3   :  { %14 = vsyncpa [#allocation4], 0  ;;  %s32_s23 = sshll.u32 %s476_s1, 4  ;;  %s408_s24 = smov [#allocation5]   ;;  %s33_s23 = int_to_ptr.hbm [resolvable:$true] %s32_s23 }
   0x4   :  { %s34_s25 = sshll.u32 %s408_s24, 4  ;;  %s19_s28 = sshll.u32 %s475_s0, 4  ;;  %s35_s25 = int_to_ptr.vmem [resolvable:$true] %s34_s25  ;;  %s20_s28 = int_to_ptr.hbm [resolvable:$true] %s19_s28 }
   0x5   :  { %s409_s29 = smov 128   ;;  %s410_s30 = smov 8  }
   0x6   :  { %40 = dma.hbm_to_vmem [thread:$0]  %s33_s23, 512, %s35_s25, [#allocation6], %s409_s29, %s409_s29, %s410_s30  }
   0x7   :  { %s411_s7 = smov [#allocation2]   ;;  %s47_s11 = sshll.u32 %s478_s3, 4  ;;  %s48_s11 = int_to_ptr.hbm [resolvable:$true] %s47_s11 }
   0x8   :  { %s21_s8 = sshll.u32 %s411_s7, 4  ;;  %s61_s13 = sshll.u32 %s479_s4, 4  ;;  %s22_s8 = int_to_ptr.vmem [resolvable:$true] %s21_s8  ;;  %s62_s13 = int_to_ptr.hbm [resolvable:$true] %s61_s13 }
   0x9   :  { %27 = dma.hbm_to_vmem [thread:$0]  %s20_s28, 256, %s22_s8, [#allocation3], %s409_s29, %s409_s29, %s410_s30  }
   0xa   :  { %s412_s14 = smov [#allocation7]   ;;  %s413_s0 = smov [#allocation8]  }
   0xb   :  { %s49_s15 = sshll.u32 %s412_s14, 4  ;;  %s63_s16 = sshll.u32 %s413_s0, 4  ;;  %s50_s15 = int_to_ptr.vmem [resolvable:$true] %s49_s15  ;;  %s64_s16 = int_to_ptr.vmem [resolvable:$true] %s63_s16 }
   0xc   :  { %55 = dma.hbm_to_vmem [thread:$0]  %s48_s11, 512, %s50_s15, [#allocation6], %s409_s29, %s409_s29, %s410_s30  }
   0xd   :  { %66 = dma.hbm_to_vmem [thread:$0]  %s62_s13, 16, %s64_s16, [#allocation9]  }
   0xe   :  { %400 = dma.done.wait [#allocation3], 256  }
   0xf   :  { %401 = vsyncadd [#allocation3], 4294967040 }
  0x10   :  { %402 = dma.done.wait [#allocation6], 1024  }
  0x11   :  { %403 = vsyncadd [#allocation6], 4294966272 }
  0x12   :  { %404 = dma.done.wait [#allocation9], 16  }
  0x13   :  { %405 = vsyncadd [#allocation9], 4294967280  ;;  %v90_v0 = vld [vmem:[#allocation5 + $0x18] sm:$0xff]  ;;  %v89_v1 = vld [vmem:[#allocation5 + $0x10] sm:$0xff]  ;;  %vm95_vm0 = vcmask 261120   ;;  %vm209_vm9 = vcmask 130048  }
  0x14   :  { %114 = vmatpush.msra.mxu0 %v90_v0  ;;  %259 = vmatpush.msra.mxu3 %v90_v0  ;;  %v88_v2 = vld [vmem:[#allocation5 + $0x8] sm:$0xff]  ;;  %v87_v3 = vld [vmem:[#allocation5] sm:$0xff]  ;;  %v85_v4 = vld [vmem:[#allocation2] sm:$0xff]  ;;  %s414_s18 = smov [#allocation10]   ;;  %s242_s22 = sshll.u32 %s481_s6, 4  ;;  %vm233_vm10 = vcmask 517120   ;;  %s243_s22 = int_to_ptr.hbm [resolvable:$true] %s242_s22 }
  0x15   :  { %v86_v5 = vld [vmem:[#allocation2 + $0x8] sm:$0xff]  ;;  %v270_v6 = vld [vmem:[%s477_s2] ss:$0 sm:$0xff]  ;;  %v170_v15 = vld [vmem:[#allocation7 + $0x8] sm:$0xff]  ;;  %s240_s19 = sshll.u32 %s414_s18, 4  ;;  %s241_s19 = int_to_ptr.vmem [resolvable:$true] %s240_s19 }
  0x16   :  { %115 = vmatpush.msra.mxu0 %v89_v1  ;;  %260 = vmatpush.msra.mxu3 %v89_v1  ;;  %v172_v10 = vld [vmem:[#allocation7 + $0x18] sm:$0xff]  ;;  %v171_v12 = vld [vmem:[#allocation7 + $0x10] sm:$0xff]  ;;  %v169_v17 = vld [vmem:[#allocation7] sm:$0xff] }
  0x17   :  { %195 = vmatpush.msra.mxu1 %v172_v10  ;;  %v271_v52 = vld [vmem:[#allocation8] ss:$0 sm:$0xff]  ;;  %v208_v58 = vld [vmem:[%s480_s5] sm:$0x3] }
  0x18   :  { %116 = vmatpush.msra.mxu0 %v88_v2  ;;  %261 = vmatpush.msra.mxu3 %v88_v2 }
  0x19   :  { %196 = vmatpush.msra.mxu1 %v171_v12 }
  0x1a   :  { %117 = vmatpush.msra.mxu0 %v87_v3  ;;  %262 = vmatpush.msra.mxu3 %v87_v3 }
  0x1b   :  { %254 = vmatmul.msk.f32.vlgmr.msra.gmra.mxu0 %vm95_vm0, %v85_v4  ;;  %255 = vmatmul.msk.f32.vlgmr.msra.gmra.mxu3 %vm95_vm0, %v86_v5 }
  0x1c   :  { %197 = vmatpush.msra.mxu1 %v170_v15 }
  0x1e   :  { %198 = vmatpush.msra.mxu1 %v169_v17 }
  0x98   :  { %v119_v7 = vpop.f32.mrf.mxu0 }
  0x99   :  { %v120_v8 = vadd.f32 %v270_v6, %v119_v7 }
  0x9b   :  { %v125_v9 = vmin.f32 %v120_v8, 20.0 }
  0x9d   :  { %v127_v11 = vmul.f32 1.442695, %v125_v9 }
  0x9e   :  { %v122_v13 = vpop.f32.mrf.mxu3 }
  0x9f   :  { %272 = vpow2.f32 %v127_v11  ;;  %v123_v14 = vadd.f32 %v270_v6, %v122_v13 }
  0xa1   :  { %v126_v16 = vmin.f32 %v123_v14, 20.0 }
  0xa3   :  { %v129_v18 = vmul.f32 1.442695, %v126_v16 }
  0xa5   :  { %v273_v19 = vpop.eup %272  ;;  %274 = vpow2.f32 %v129_v18 }
  0xa6   :  { %v131_v20 = vadd.f32 2.0, %v273_v19 }
  0xa8   :  { %v133_v21 = vmul.f32 %v273_v19, %v131_v20 }
  0xaa   :  { %v135_v22 = vadd.f32 2.0, %v133_v21 }
  0xab   :  { %v275_v23 = vpop.eup %274 }
  0xac   :  { %276 = vrcp.f32 %v135_v22  ;;  %v132_v24 = vadd.f32 2.0, %v275_v23  ;;  %v148_v30 = vand.u32 2147483648, %v135_v22  ;;  %v146_v32 = vand.u32 2147483647, %v135_v22 }
  0xad   :  { %vm142_vm2 = vweird.f32 %v135_v22 }
  0xae   :  { %v134_v25 = vmul.f32 %v275_v23, %v132_v24  ;;  %v149_v35 = vor.u32 1.1754944e-38, %v148_v30  ;;  %vm147_vm4 = vcmp.eq.f32.partialorder %v146_v32, 8.507059e+37 }
  0xb0   :  { %v136_v26 = vadd.f32 2.0, %v134_v25 }
  0xb2   :  { %v277_v27 = vpop.eup %276  ;;  %278 = vrcp.f32 %v136_v26  ;;  %v163_v41 = vand.u32 2147483648, %v136_v26  ;;  %v161_v43 = vand.u32 2147483647, %v136_v26  ;;  %vm157_vm6 = vweird.f32 %v136_v26 }
  0xb3   :  { %v138_v28 = vmul.f32 %v277_v27, %v135_v22  ;;  %vm143_vm1 = vweird.f32 %v277_v27 }
  0xb4   :  { %vm144_vm3 = vmor %vm142_vm2, %vm143_vm1  ;;  %v164_v46 = vor.u32 1.1754944e-38, %v163_v41  ;;  %vm162_vm8 = vcmp.eq.f32.partialorder %v161_v43, 8.507059e+37 }
  0xb5   :  { %v139_v29 = vsub.f32 1.0, %v138_v28 }
  0xb7   :  { %v140_v31 = vmul.f32 %v277_v27, %v139_v29 }
  0xb8   :  { %v279_v33 = vpop.eup %278 }
  0xb9   :  { %v141_v34 = vadd.f32 %v277_v27, %v140_v31  ;;  %v153_v36 = vmul.f32 %v279_v33, %v136_v26  ;;  %vm158_vm5 = vweird.f32 %v279_v33 }
  0xba   :  { %vm159_vm7 = vmor %vm157_vm6, %vm158_vm5 }
  0xbb   :  { %v145_v37 = vsel %vm144_vm3, %v277_v27, %v141_v34  ;;  %v154_v39 = vsub.f32 1.0, %v153_v36 }
  0xbc   :  { %v150_v38 = vsel %vm147_vm4, %v149_v35, %v145_v37 }
  0xbd   :  { %v151_v40 = vmul.f32 %v150_v38, %v133_v21  ;;  %v155_v42 = vmul.f32 %v279_v33, %v154_v39 }
  0xbf   :  { %v167_v44 = vmul.f32 %v151_v40, %v120_v8  ;;  %v156_v45 = vadd.f32 %v279_v33, %v155_v42 }
  0xc1   :  { %256 = vmatmul.msk.f32.vlgmr.msra.gmra.mxu1 %vm95_vm0, %v167_v44  ;;  %v160_v47 = vsel %vm159_vm7, %v279_v33, %v156_v45 }
  0xc2   :  { %v165_v48 = vsel %vm162_vm8, %v164_v46, %v160_v47 }
  0xc3   :  { %v166_v49 = vmul.f32 %v165_v48, %v134_v25 }
  0xc5   :  { %v168_v50 = vmul.f32 %v166_v49, %v123_v14 }
  0xc9   :  { %257 = vmatmul.msk.f32.gmra.mxu1 %vm95_vm0, %v168_v50 }
 0x13e   :  { %v200_v51 = vpop.f32.mrf.mxu1 }
 0x13f   :  { %v201_v54 = vadd.f32 %v271_v52, %v200_v51 }
 0x141   :  { %v206_v57 = vmax.f32 %v201_v54, 0.0 }
 0x146   :  { %v203_v53 = vpop.f32.mrf.mxu1 }
 0x147   :  { %v204_v55 = vadd.f32 %v271_v52, %v203_v53 }
 0x149   :  { %v207_v56 = vmax.f32 %v204_v55, 0.0 }
 0x14b   :  { %227 = vmatpush.msra.mxu2 %v207_v56 }
 0x14d   :  { %228 = vmatpush.msra.mxu2 %v206_v57 }
 0x14e   :  { %258 = vmatmul.msk.f32.vlgmr.msra.gmra.mxu2 %vm209_vm9, %v208_v58 }
 0x1d1   :  { %v230_v59 = vpop.f32.mrf.mxu2 }
 0x1d2   :  { %234 = vst.msk [vmem:[#allocation10] sm:$0x3] %vm233_vm10, %v230_v59 }
 0x1d3   :  { %245 = dma.vmem_to_hbm [thread:$0]  %s241_s19, 32, %s243_s22, [#allocation4]  }
 0x1d4   :  { %406 = dma.done.wait [#allocation4], 32  }
 0x1d5   :  { %407 = vsyncadd [#allocation4], 4294967264 }
 0x1d6   :  { %250 = vsyncpa [#allocation3], 1 }
 0x1d7   :  { %251 = vsyncpa [#allocation6], 1 }
 0x1d8   :  { %252 = vsyncpa [#allocation9], 1 }
 0x1d9   :  { %253 = vsyncpa [#allocation4], 1 }

</bundles_post_ra>
